<compile_context>
chip_gen: v5e
topology: v5e:2x2
jax: 0.10.0
libtpu: 0.0.40
codegen_flags: <defaults>
</compile_context>

<pallas_src>
import functools

import jax
import jax.numpy as jnp
from jax import lax
from jax.experimental import pallas as pl
from jax.experimental.pallas import tpu as pltpu


def _round_up(v, m):
    return (v + m - 1) // m * m


def _pick_batch_block(N, L, max_rows=1024, min_steps=4):
    """Largest divisor Nb of N with Nb*L <= max_rows while keeping the grid at
    least min(min_steps, N) steps (pipelining + megacore sharding)."""
    best = 1
    need = min(min_steps, N)
    for cand in range(1, N + 1):
        if N % cand:
            continue
        if cand * L <= max_rows and (N // cand) >= need:
            best = cand
    return best


def _make_kernel(K, dil, L, Nb, Cin_p, Chid_p, Cout_p, has_res, is_last_block):
    """Fused residual-block kernel for one (Nb, L) block of batch elements."""
    rows = Nb * L
    # Tap k of the causal dilated conv reads x[t - (K-1-k)*dil] (zero if < 0).
    offsets = [(K - 1 - k) * dil for k in range(K)]

    def kernel(x_ref, w1_ref, sh1_ref, w2_ref, sh2_ref, *rest):
        if has_res:
            wr_ref, br_ref, o_ref = rest
        else:
            (o_ref,) = rest

        x_f32 = x_ref[...].reshape(rows, Cin_p)          # (Nb*L, Cin_p) f32
        x_bf = x_f32.astype(jnp.bfloat16)

        # Per-row "time within sequence" index. Rows rolled in from a
        # neighbouring batch element always land where t < offset and are
        # masked to zero (the causal pad region), so batches never mix.
        t_in_seq = lax.broadcasted_iota(jnp.int32, (rows, 1), 0) % L

        def dilated_conv(v_f32, v_bf, w_ref, c_out):
            """Causal dilated conv as K accumulated MXU matmuls."""
            acc = None
            for k, o in enumerate(offsets):
                if o >= L:
                    continue          # tap lies entirely in the causal zeros
                if o == 0:
                    tap = v_bf
                else:
                    # XLU sublane rotate (otherwise-idle slot) + VPU mask/cast;
                    # no concatenate/slice VMEM copies on the ld/st slots.
                    shifted = pltpu.roll(v_f32, shift=o, axis=0)
                    tap = jnp.where(t_in_seq >= o, shifted,
                                    0.0).astype(jnp.bfloat16)
                contrib = jnp.dot(tap, w_ref[k],
                                  preferred_element_type=jnp.float32)
                acc = contrib if acc is None else acc + contrib
            if acc is None:
                acc = jnp.zeros((rows, c_out), jnp.float32)
            return acc

        # ---- conv1 (+ folded bias/BN) + ReLU (Dropout = identity, eval) ----
        h = dilated_conv(x_f32, x_bf, w1_ref, Chid_p) + sh1_ref[...]
        h = jnp.maximum(h, 0.0)
        h_bf = h.astype(jnp.bfloat16)

        # ---- conv2 (+ folded bias/BN) on in-register hidden activations ----
        out = dilated_conv(h, h_bf, w2_ref, Cout_p) + sh2_ref[...]
        if not is_last_block:
            out = jnp.maximum(out, 0.0)                  # ReLU (Dropout = id)

        # ---- residual path (1x1 conv or exact f32 identity) ----
        if has_res:
            ident = jnp.dot(x_bf, wr_ref[...],
                            preferred_element_type=jnp.float32) + br_ref[...]
        else:
            ident = x_f32                                # Cin_p == Cout_p here
        out = out + ident

        o_ref[...] = out.reshape(Nb, L, Cout_p)          # single lane-dense st

    return kernel


def _prepare_operands(params, K, C_in, C_hid, C_out,
                      Cin_p, Chid_p, Cout_p, has_res):
    """Fold BN into conv weights/bias, pad channels to 128, cast to bf16."""
    s1, t1 = params["bn1_scale"], params["bn1_shift"]
    s2, t2 = params["bn2_scale"], params["bn2_shift"]

    w1 = params["w1"] * s1.reshape(1, 1, C_hid)           # (K, C_in, C_hid)
    sh1 = params["b1"] * s1 + t1                          # (1, C_hid)
    w2 = params["w2"] * s2.reshape(1, 1, C_out)           # (K, C_hid, C_out)
    sh2 = params["b2"] * s2 + t2                          # (1, C_out)

    w1p = jnp.pad(w1, ((0, 0), (0, Cin_p - C_in),
                       (0, Chid_p - C_hid))).astype(jnp.bfloat16)
    w2p = jnp.pad(w2, ((0, 0), (0, Chid_p - C_hid),
                       (0, Cout_p - C_out))).astype(jnp.bfloat16)
    sh1p = jnp.pad(sh1, ((0, 0), (0, Chid_p - C_hid))).astype(jnp.float32)
    sh2p = jnp.pad(sh2, ((0, 0), (0, Cout_p - C_out))).astype(jnp.float32)

    ops = [w1p, sh1p, w2p, sh2p]
    if has_res:
        wrp = jnp.pad(params["wr"], ((0, Cin_p - C_in),
                                     (0, Cout_p - C_out))).astype(jnp.bfloat16)
        brp = jnp.pad(params["br"],
                      ((0, 0), (0, Cout_p - C_out))).astype(jnp.float32)
        ops += [wrp, brp]
    return ops


def residual_block_forward(x_ncl, params, *, kernel_size, dilation, is_last_block):
    """x_ncl: (N, C_in, L) float32  ->  (N, C_out, L) float32."""
    N, C_in, L = x_ncl.shape
    K, dil = kernel_size, dilation
    C_hid = params["w1"].shape[2]
    C_out = params["w2"].shape[2]
    has_res = "wr" in params

    Cin_p = _round_up(C_in, 128)
    Chid_p = _round_up(C_hid, 128)
    Cout_p = _round_up(C_out, 128)
    Nb = _pick_batch_block(N, L)
    grid = (N // Nb,)

    # Glue: NCL -> NLC plus lane (channel) zero-padding. Single fused XLA copy;
    # no time-axis padding in HBM (causal zeros are built in-kernel).
    # TODO(synk): when stacking many ResidualBlocks keep activations in
    #             channel-padded NLC between blocks to avoid these HBM
    #             transpose round trips (convert only at network boundaries).
    x_nlc = jnp.pad(jnp.transpose(x_ncl, (0, 2, 1)),
                    ((0, 0), (0, 0), (0, Cin_p - C_in)))  # (N, L, Cin_p) f32

    w_args = _prepare_operands(params, K, C_in, C_hid, C_out,
                               Cin_p, Chid_p, Cout_p, has_res)

    # Explicit scoped-VMEM budget: double-buffered in/out blocks + weights +
    # in-kernel temporaries (taps/acc/h), x2 headroom, clamped to a range safe
    # on v5e (16 MiB default scoped), v6e (32 MiB) and v7x (64 MiB physical).
    rows = Nb * L
    est = (2 * rows * (Cin_p + Cout_p) * 4
           + 2 * sum(int(a.size) * a.dtype.itemsize for a in w_args)
           + 3 * rows * (Cin_p + Chid_p + Cout_p) * 4)
    vmem_limit = int(min(max(2 * est, 32 * 1024 * 1024), 48 * 1024 * 1024))

    def _full(a):
        return pl.BlockSpec(a.shape, lambda n, _nd=a.ndim: (0,) * _nd)

    in_specs = ([pl.BlockSpec((Nb, L, Cin_p), lambda n: (n, 0, 0))]
                + [_full(a) for a in w_args])

    kernel = _make_kernel(K, dil, L, Nb, Cin_p, Chid_p, Cout_p,
                          has_res, is_last_block)

    out_nlc = pl.pallas_call(
        kernel,
        out_shape=jax.ShapeDtypeStruct((N, L, Cout_p), jnp.float32),
        grid_spec=pltpu.PrefetchScalarGridSpec(
            num_scalar_prefetch=0,
            grid=grid,
            in_specs=in_specs,
            out_specs=pl.BlockSpec((Nb, L, Cout_p), lambda n: (n, 0, 0)),
        ),
        compiler_params=pltpu.CompilerParams(
            dimension_semantics=("parallel",),
            vmem_limit_bytes=vmem_limit),
    )(x_nlc, *w_args)

    # Strip channel padding and go back to the module's NCL layout.
    return jnp.transpose(out_nlc[:, :, :C_out], (0, 2, 1))


# ---------------------------------------------------------------------------
# Pure-JAX reference (lax conv, full f32) for correctness checking.
# ---------------------------------------------------------------------------
def _reference(x, p, *, kernel_size, dilation, is_last_block):
    K, dil = kernel_size, dilation
    pad = dil * (K - 1)
    dn = ("NCH", "OIH", "NCH")

    def causal_conv(inp, w_kio, b):        # w_kio: (K, C_in, C_out)
        w_oik = jnp.transpose(w_kio, (2, 1, 0))           # (O, I, K)
        xp = jnp.pad(inp, ((0, 0), (0, 0), (pad, 0)))
        y = lax.conv_general_dilated(xp, w_oik, window_strides=(1,),
                                     padding="VALID", rhs_dilation=(dil,),
                                     dimension_numbers=dn)
        return y + b.reshape(1, -1, 1)

    h = causal_conv(x, p["w1"], p["b1"])
    h = h * p["bn1_scale"].reshape(1, -1, 1) + p["bn1_shift"].reshape(1, -1, 1)
    h = jnp.maximum(h, 0.0)
    o = causal_conv(h, p["w2"], p["b2"])
    o = o * p["bn2_scale"].reshape(1, -1, 1) + p["bn2_shift"].reshape(1, -1, 1)
    if not is_last_block:
        o = jnp.maximum(o, 0.0)
    if "wr" in p:
        ident = jnp.einsum("ncl,co->nol", x, p["wr"]) + p["br"].reshape(1, -1, 1)
    else:
        ident = x
    return o + ident


def _init_params(key, C_in, C_out, C_hid, K, has_res):
    ks = jax.random.split(key, 6)
    eps = 1e-5
    params = {
        # Conv weights ~ N(0, 0.01) as in init_weights(); stored as (K, I, O).
        "w1": 0.01 * jax.random.normal(ks[0], (K, C_in, C_hid), jnp.float32),
        "b1": jax.random.uniform(ks[1], (1, C_hid), jnp.float32, -0.1, 0.1),
        "w2": 0.01 * jax.random.normal(ks[2], (K, C_hid, C_out), jnp.float32),
        "b2": jax.random.uniform(ks[3], (1, C_out), jnp.float32, -0.1, 0.1),
        # BatchNorm default init: gamma=1, beta=0, running_mean=0, running_var=1.
        "bn1_scale": jnp.full((1, C_hid), 1.0 / jnp.sqrt(1.0 + eps), jnp.float32),
        "bn1_shift": jnp.zeros((1, C_hid), jnp.float32),
        "bn2_scale": jnp.full((1, C_out), 1.0 / jnp.sqrt(1.0 + eps), jnp.float32),
        "bn2_shift": jnp.zeros((1, C_out), jnp.float32),
    }
    if has_res:
        params["wr"] = 0.01 * jax.random.normal(ks[4], (C_in, C_out), jnp.float32)
        params["br"] = jax.random.uniform(ks[5], (1, C_out), jnp.float32, -0.1, 0.1)
    return params


if __name__ == "__main__":
    # Small shapes consistent with the module:
    N, C_in, C_out, L = 2, 4, 8, 16
    K, dilation, is_last_block = 3, 2, False
    C_hid = C_in if is_last_block else C_out
    has_res = C_in != C_out

    key = jax.random.PRNGKey(0)
    kx, kp = jax.random.split(key)
    x = jax.random.normal(kx, (N, C_in, L), jnp.float32)
    params = _init_params(kp, C_in, C_out, C_hid, K, has_res)

    fwd = jax.jit(functools.partial(residual_block_forward,
                                    kernel_size=K, dilation=dilation,
                                    is_last_block=is_last_block))
    out = fwd(x, params)
    jax.block_until_ready(out)

    ref = _reference(x, params, kernel_size=K, dilation=dilation,
                     is_last_block=is_last_block)
    assert out.shape == (N, C_out, L)
    max_err = float(jnp.max(jnp.abs(out - ref)))
    # bf16 matmul operands (f32 accumulation) => loosen tolerance slightly.
    assert jnp.allclose(out, ref, atol=3e-3, rtol=3e-2), (
        f"mismatch vs reference (max abs err {max_err:.3e})")
    print("KERNEL_OK")
</pallas_src>

<mosaic_0001>
module attributes {stable_mosaic.version = 11 : i64} {
  func.func @kernel(%arg0: i32, %arg1: memref<1x16x128xf32, #tpu.memory_space<vmem>>, %arg2: memref<3x128x128xbf16, #tpu.memory_space<vmem>>, %arg3: memref<1x128xf32, #tpu.memory_space<vmem>>, %arg4: memref<3x128x128xbf16, #tpu.memory_space<vmem>>, %arg5: memref<1x128xf32, #tpu.memory_space<vmem>>, %arg6: memref<128x128xbf16, #tpu.memory_space<vmem>>, %arg7: memref<1x128xf32, #tpu.memory_space<vmem>>, %arg8: memref<1x16x128xf32, #tpu.memory_space<vmem>>) attributes {dimension_semantics = [#tpu.dimension_semantics<parallel>], iteration_bounds = array<i64: 2>, scalar_prefetch = 0 : i64, scratch_operands = 0 : i64, tpu.core_type = #tpu.core_type<tc>, window_params = [{transform_indices = @transform_0, window_bounds = array<i64: 1, 16, 128>}, {pipeline_mode = #tpu.pipeline_mode<synchronous>, transform_indices = @transform_1, window_bounds = array<i64: 3, 128, 128>}, {pipeline_mode = #tpu.pipeline_mode<synchronous>, transform_indices = @transform_2, window_bounds = array<i64: 1, 128>}, {pipeline_mode = #tpu.pipeline_mode<synchronous>, transform_indices = @transform_3, window_bounds = array<i64: 3, 128, 128>}, {pipeline_mode = #tpu.pipeline_mode<synchronous>, transform_indices = @transform_4, window_bounds = array<i64: 1, 128>}, {pipeline_mode = #tpu.pipeline_mode<synchronous>, transform_indices = @transform_5, window_bounds = array<i64: 128, 128>}, {pipeline_mode = #tpu.pipeline_mode<synchronous>, transform_indices = @transform_6, window_bounds = array<i64: 1, 128>}, {transform_indices = @transform_7, window_bounds = array<i64: 1, 16, 128>}]} {
    %c0 = arith.constant 0 : index
    %c0_0 = arith.constant 0 : index
    %c0_1 = arith.constant 0 : index
    %0 = vector.load %arg1[%c0, %c0_0, %c0_1] : memref<1x16x128xf32, #tpu.memory_space<vmem>>, vector<1x16x128xf32>
    %1 = vector.shape_cast %0 : vector<1x16x128xf32> to vector<16x128xf32>
    %2 = arith.truncf %1 : vector<16x128xf32> to vector<16x128xbf16>
    %3 = tpu.iota {dimensions = array<i32: 0>} : vector<16x1xi32>
    %c16_i32 = arith.constant 16 : i32
    %c0_i32 = arith.constant 0 : i32
    %4 = arith.cmpi eq, %c16_i32, %c0_i32 : i32
    %c1_i32 = arith.constant 1 : i32
    %5 = arith.select %4, %c1_i32, %c16_i32 : i32
    %6 = vector.broadcast %5 : i32 to vector<16x1xi32>
    %7 = arith.remsi %3, %6 : vector<16x1xi32>
    %c0_i32_2 = arith.constant 0 : i32
    %8 = vector.broadcast %c0_i32_2 : i32 to vector<16x1xi32>
    %9 = arith.cmpi ne, %7, %8 : vector<16x1xi32>
    %c0_i32_3 = arith.constant 0 : i32
    %10 = vector.broadcast %c0_i32_3 : i32 to vector<16x1xi32>
    %11 = arith.cmpi slt, %7, %10 : vector<16x1xi32>
    %c0_i32_4 = arith.constant 0 : i32
    %12 = arith.cmpi slt, %5, %c0_i32_4 : i32
    %13 = vector.broadcast %12 : i1 to vector<16x1xi1>
    %14 = vector.broadcast %13 : vector<16x1xi1> to vector<16x1xi1>
    %15 = arith.xori %11, %14 : vector<16x1xi1>
    %16 = arith.andi %15, %9 : vector<16x1xi1>
    %17 = vector.broadcast %5 : i32 to vector<16x1xi32>
    %18 = arith.addi %7, %17 : vector<16x1xi32>
    %19 = arith.select %16, %18, %7 : vector<16x1xi1>, vector<16x1xi32>
    %c4_i32 = arith.constant 4 : i32
    %20 = tpu.dynamic_rotate %1 by %c4_i32 dim 0 : vector<16x128xf32>, i32 -> vector<16x128xf32>
    %c4_i32_5 = arith.constant 4 : i32
    %21 = vector.broadcast %c4_i32_5 : i32 to vector<16x1xi32>
    %22 = arith.cmpi sge, %19, %21 : vector<16x1xi32>
    %cst = arith.constant 0.000000e+00 : f32
    %23 = vector.shape_cast %22 : vector<16x1xi1> to vector<16x1xi1>
    %24 = vector.broadcast %23 : vector<16x1xi1> to vector<16x128xi1>
    %25 = vector.broadcast %cst : f32 to vector<16x128xf32>
    %26 = arith.select %24, %20, %25 : vector<16x128xi1>, vector<16x128xf32>
    %27 = arith.truncf %26 : vector<16x128xf32> to vector<16x128xbf16>
    %c0_6 = arith.constant 0 : index
    %c0_7 = arith.constant 0 : index
    %c0_8 = arith.constant 0 : index
    %28 = vector.load %arg2[%c0_6, %c0_7, %c0_8] : memref<3x128x128xbf16, #tpu.memory_space<vmem>>, vector<1x128x128xbf16>
    %29 = vector.shape_cast %28 : vector<1x128x128xbf16> to vector<128x128xbf16>
    %cst_9 = arith.constant dense<0.000000e+00> : vector<16x128xf32>
    %30 = tpu.matmul %27, %29, %cst_9 {dimension_numbers = #tpu.dot_dimension_numbers<[1], [0], [0], [1], [0, 0, 1, 1], [], []>} : vector<16x128xbf16>, vector<128x128xbf16>, vector<16x128xf32> -> vector<16x128xf32>
    %c2_i32 = arith.constant 2 : i32
    %31 = tpu.dynamic_rotate %1 by %c2_i32 dim 0 : vector<16x128xf32>, i32 -> vector<16x128xf32>
    %c2_i32_10 = arith.constant 2 : i32
    %32 = vector.broadcast %c2_i32_10 : i32 to vector<16x1xi32>
    %33 = arith.cmpi sge, %19, %32 : vector<16x1xi32>
    %cst_11 = arith.constant 0.000000e+00 : f32
    %34 = vector.shape_cast %33 : vector<16x1xi1> to vector<16x1xi1>
    %35 = vector.broadcast %34 : vector<16x1xi1> to vector<16x128xi1>
    %36 = vector.broadcast %cst_11 : f32 to vector<16x128xf32>
    %37 = arith.select %35, %31, %36 : vector<16x128xi1>, vector<16x128xf32>
    %38 = arith.truncf %37 : vector<16x128xf32> to vector<16x128xbf16>
    %c1 = arith.constant 1 : index
    %c0_12 = arith.constant 0 : index
    %c0_13 = arith.constant 0 : index
    %39 = vector.load %arg2[%c1, %c0_12, %c0_13] : memref<3x128x128xbf16, #tpu.memory_space<vmem>>, vector<1x128x128xbf16>
    %40 = vector.shape_cast %39 : vector<1x128x128xbf16> to vector<128x128xbf16>
    %cst_14 = arith.constant dense<0.000000e+00> : vector<16x128xf32>
    %41 = tpu.matmul %38, %40, %cst_14 {dimension_numbers = #tpu.dot_dimension_numbers<[1], [0], [0], [1], [0, 0, 1, 1], [], []>} : vector<16x128xbf16>, vector<128x128xbf16>, vector<16x128xf32> -> vector<16x128xf32>
    %42 = arith.addf %30, %41 : vector<16x128xf32>
    %c2 = arith.constant 2 : index
    %c0_15 = arith.constant 0 : index
    %c0_16 = arith.constant 0 : index
    %43 = vector.load %arg2[%c2, %c0_15, %c0_16] : memref<3x128x128xbf16, #tpu.memory_space<vmem>>, vector<1x128x128xbf16>
    %44 = vector.shape_cast %43 : vector<1x128x128xbf16> to vector<128x128xbf16>
    %cst_17 = arith.constant dense<0.000000e+00> : vector<16x128xf32>
    %45 = tpu.matmul %2, %44, %cst_17 {dimension_numbers = #tpu.dot_dimension_numbers<[1], [0], [0], [1], [0, 0, 1, 1], [], []>} : vector<16x128xbf16>, vector<128x128xbf16>, vector<16x128xf32> -> vector<16x128xf32>
    %46 = arith.addf %42, %45 : vector<16x128xf32>
    %c0_18 = arith.constant 0 : index
    %c0_19 = arith.constant 0 : index
    %47 = vector.load %arg3[%c0_18, %c0_19] : memref<1x128xf32, #tpu.memory_space<vmem>>, vector<1x128xf32>
    %48 = vector.broadcast %47 : vector<1x128xf32> to vector<16x128xf32>
    %49 = arith.addf %46, %48 : vector<16x128xf32>
    %cst_20 = arith.constant 0.000000e+00 : f32
    %50 = vector.broadcast %cst_20 : f32 to vector<16x128xf32>
    %51 = arith.maximumf %49, %50 : vector<16x128xf32>
    %52 = arith.truncf %51 : vector<16x128xf32> to vector<16x128xbf16>
    %c4_i32_21 = arith.constant 4 : i32
    %53 = tpu.dynamic_rotate %51 by %c4_i32_21 dim 0 : vector<16x128xf32>, i32 -> vector<16x128xf32>
    %c4_i32_22 = arith.constant 4 : i32
    %54 = vector.broadcast %c4_i32_22 : i32 to vector<16x1xi32>
    %55 = arith.cmpi sge, %19, %54 : vector<16x1xi32>
    %cst_23 = arith.constant 0.000000e+00 : f32
    %56 = vector.shape_cast %55 : vector<16x1xi1> to vector<16x1xi1>
    %57 = vector.broadcast %56 : vector<16x1xi1> to vector<16x128xi1>
    %58 = vector.broadcast %cst_23 : f32 to vector<16x128xf32>
    %59 = arith.select %57, %53, %58 : vector<16x128xi1>, vector<16x128xf32>
    %60 = arith.truncf %59 : vector<16x128xf32> to vector<16x128xbf16>
    %c0_24 = arith.constant 0 : index
    %c0_25 = arith.constant 0 : index
    %c0_26 = arith.constant 0 : index
    %61 = vector.load %arg4[%c0_24, %c0_25, %c0_26] : memref<3x128x128xbf16, #tpu.memory_space<vmem>>, vector<1x128x128xbf16>
    %62 = vector.shape_cast %61 : vector<1x128x128xbf16> to vector<128x128xbf16>
    %cst_27 = arith.constant dense<0.000000e+00> : vector<16x128xf32>
    %63 = tpu.matmul %60, %62, %cst_27 {dimension_numbers = #tpu.dot_dimension_numbers<[1], [0], [0], [1], [0, 0, 1, 1], [], []>} : vector<16x128xbf16>, vector<128x128xbf16>, vector<16x128xf32> -> vector<16x128xf32>
    %c2_i32_28 = arith.constant 2 : i32
    %64 = tpu.dynamic_rotate %51 by %c2_i32_28 dim 0 : vector<16x128xf32>, i32 -> vector<16x128xf32>
    %c2_i32_29 = arith.constant 2 : i32
    %65 = vector.broadcast %c2_i32_29 : i32 to vector<16x1xi32>
    %66 = arith.cmpi sge, %19, %65 : vector<16x1xi32>
    %cst_30 = arith.constant 0.000000e+00 : f32
    %67 = vector.shape_cast %66 : vector<16x1xi1> to vector<16x1xi1>
    %68 = vector.broadcast %67 : vector<16x1xi1> to vector<16x128xi1>
    %69 = vector.broadcast %cst_30 : f32 to vector<16x128xf32>
    %70 = arith.select %68, %64, %69 : vector<16x128xi1>, vector<16x128xf32>
    %71 = arith.truncf %70 : vector<16x128xf32> to vector<16x128xbf16>
    %c1_31 = arith.constant 1 : index
    %c0_32 = arith.constant 0 : index
    %c0_33 = arith.constant 0 : index
    %72 = vector.load %arg4[%c1_31, %c0_32, %c0_33] : memref<3x128x128xbf16, #tpu.memory_space<vmem>>, vector<1x128x128xbf16>
    %73 = vector.shape_cast %72 : vector<1x128x128xbf16> to vector<128x128xbf16>
    %cst_34 = arith.constant dense<0.000000e+00> : vector<16x128xf32>
    %74 = tpu.matmul %71, %73, %cst_34 {dimension_numbers = #tpu.dot_dimension_numbers<[1], [0], [0], [1], [0, 0, 1, 1], [], []>} : vector<16x128xbf16>, vector<128x128xbf16>, vector<16x128xf32> -> vector<16x128xf32>
    %75 = arith.addf %63, %74 : vector<16x128xf32>
    %c2_35 = arith.constant 2 : index
    %c0_36 = arith.constant 0 : index
    %c0_37 = arith.constant 0 : index
    %76 = vector.load %arg4[%c2_35, %c0_36, %c0_37] : memref<3x128x128xbf16, #tpu.memory_space<vmem>>, vector<1x128x128xbf16>
    %77 = vector.shape_cast %76 : vector<1x128x128xbf16> to vector<128x128xbf16>
    %cst_38 = arith.constant dense<0.000000e+00> : vector<16x128xf32>
    %78 = tpu.matmul %52, %77, %cst_38 {dimension_numbers = #tpu.dot_dimension_numbers<[1], [0], [0], [1], [0, 0, 1, 1], [], []>} : vector<16x128xbf16>, vector<128x128xbf16>, vector<16x128xf32> -> vector<16x128xf32>
    %79 = arith.addf %75, %78 : vector<16x128xf32>
    %c0_39 = arith.constant 0 : index
    %c0_40 = arith.constant 0 : index
    %80 = vector.load %arg5[%c0_39, %c0_40] : memref<1x128xf32, #tpu.memory_space<vmem>>, vector<1x128xf32>
    %81 = vector.broadcast %80 : vector<1x128xf32> to vector<16x128xf32>
    %82 = arith.addf %79, %81 : vector<16x128xf32>
    %cst_41 = arith.constant 0.000000e+00 : f32
    %83 = vector.broadcast %cst_41 : f32 to vector<16x128xf32>
    %84 = arith.maximumf %82, %83 : vector<16x128xf32>
    %c0_42 = arith.constant 0 : index
    %c0_43 = arith.constant 0 : index
    %85 = vector.load %arg6[%c0_42, %c0_43] : memref<128x128xbf16, #tpu.memory_space<vmem>>, vector<128x128xbf16>
    %cst_44 = arith.constant dense<0.000000e+00> : vector<16x128xf32>
    %86 = tpu.matmul %2, %85, %cst_44 {dimension_numbers = #tpu.dot_dimension_numbers<[1], [0], [0], [1], [0, 0, 1, 1], [], []>} : vector<16x128xbf16>, vector<128x128xbf16>, vector<16x128xf32> -> vector<16x128xf32>
    %c0_45 = arith.constant 0 : index
    %c0_46 = arith.constant 0 : index
    %87 = vector.load %arg7[%c0_45, %c0_46] : memref<1x128xf32, #tpu.memory_space<vmem>>, vector<1x128xf32>
    %88 = vector.broadcast %87 : vector<1x128xf32> to vector<16x128xf32>
    %89 = arith.addf %86, %88 : vector<16x128xf32>
    %90 = arith.addf %84, %89 : vector<16x128xf32>
    %91 = vector.shape_cast %90 : vector<16x128xf32> to vector<1x16x128xf32>
    %c0_47 = arith.constant 0 : index
    %c0_48 = arith.constant 0 : index
    %c0_49 = arith.constant 0 : index
    %92 = vector.load %arg8[%c0_47, %c0_48, %c0_49] : memref<1x16x128xf32, #tpu.memory_space<vmem>>, vector<1x16x128xf32>
    tpu.vector_store %arg8[%c0_47, %c0_48, %c0_49], %91 {strides = array<i32>} : memref<1x16x128xf32, #tpu.memory_space<vmem>>, vector<1x16x128xf32>,
    return
  }
  func.func @transform_0(%arg0: i32) -> (i32, i32, i32) {
    %c0_i32 = arith.constant 0 : i32
    %c0_i32_0 = arith.constant 0 : i32
    %c0_i32_1 = arith.constant 0 : i32
    return %arg0, %c0_i32, %c0_i32_0 : i32, i32, i32
  }
  func.func @transform_1(%arg0: i32) -> (i32, i32, i32) {
    %c0_i32 = arith.constant 0 : i32
    %c0_i32_0 = arith.constant 0 : i32
    %c0_i32_1 = arith.constant 0 : i32
    %c0_i32_2 = arith.constant 0 : i32
    return %c0_i32, %c0_i32_0, %c0_i32_1 : i32, i32, i32
  }
  func.func @transform_2(%arg0: i32) -> (i32, i32) {
    %c0_i32 = arith.constant 0 : i32
    %c0_i32_0 = arith.constant 0 : i32
    %c0_i32_1 = arith.constant 0 : i32
    return %c0_i32, %c0_i32_0 : i32, i32
  }
  func.func @transform_3(%arg0: i32) -> (i32, i32, i32) {
    %c0_i32 = arith.constant 0 : i32
    %c0_i32_0 = arith.constant 0 : i32
    %c0_i32_1 = arith.constant 0 : i32
    %c0_i32_2 = arith.constant 0 : i32
    return %c0_i32, %c0_i32_0, %c0_i32_1 : i32, i32, i32
  }
  func.func @transform_4(%arg0: i32) -> (i32, i32) {
    %c0_i32 = arith.constant 0 : i32
    %c0_i32_0 = arith.constant 0 : i32
    %c0_i32_1 = arith.constant 0 : i32
    return %c0_i32, %c0_i32_0 : i32, i32
  }
  func.func @transform_5(%arg0: i32) -> (i32, i32) {
    %c0_i32 = arith.constant 0 : i32
    %c0_i32_0 = arith.constant 0 : i32
    %c0_i32_1 = arith.constant 0 : i32
    return %c0_i32, %c0_i32_0 : i32, i32
  }
  func.func @transform_6(%arg0: i32) -> (i32, i32) {
    %c0_i32 = arith.constant 0 : i32
    %c0_i32_0 = arith.constant 0 : i32
    %c0_i32_1 = arith.constant 0 : i32
    return %c0_i32, %c0_i32_0 : i32, i32
  }
  func.func @transform_7(%arg0: i32) -> (i32, i32, i32) {
    %c0_i32 = arith.constant 0 : i32
    %c0_i32_0 = arith.constant 0 : i32
    %c0_i32_1 = arith.constant 0 : i32
    return %arg0, %c0_i32, %c0_i32_0 : i32, i32, i32
  }
}

</mosaic_0001>

<bundles_post_ra>
// kernel: residual_block_forward.1
= control target key start
LH: loop header
LB: loop body
LE: loop exit
PB: predicated region body
PF: predicated region fallthrough
CT: control target
= control target key end

     0   :  { %s1415_s24 = smov 0   ;;  %s1653_s0 = inlined_call_operand.vmem [shape: f32[2,16,128], index: 0, kind: input, shape index: {}]   ;;  %s1654_s1 = inlined_call_operand.vmem [shape: bf16[3,128,128], index: 1, kind: input, shape index: {}]   ;;  %s1655_s2 = inlined_call_operand.vmem [shape: f32[1,128], index: 2, kind: input, shape index: {}]   ;;  %s1656_s3 = inlined_call_operand.vmem [shape: bf16[3,128,128], index: 3, kind: input, shape index: {}]   ;;  %s1657_s4 = inlined_call_operand.vmem [shape: f32[1,128], index: 4, kind: input, shape index: {}]   ;;  %s1658_s5 = inlined_call_operand.vmem [shape: bf16[128,128], index: 5, kind: input, shape index: {}]   ;;  %s1659_s6 = inlined_call_operand.vmem [shape: f32[1,128], index: 6, kind: input, shape index: {}]   ;;  %s1660_s7 = inlined_call_operand.vmem [shape: f32[2,16,128], index: 7, kind: output, shape index: {}]  }
   0x1 LB: > { %s985_s25 = sadd.s32 4294967295, %s1372_s24   ;;  %p989_p0 = scmp.ge.s32.totalorder %s1372_s24, 1  ;;  %s1372_s24 = sphi %s1415_s24, %s17_s24  }
   0x2   : > { %p237_p1 = scmp.lt.s32.totalorder %s1372_s24, 3 }
   0x4   : > { %p238_p2 = pnand %p989_p0, %p237_p1 }
   0x5   : > { %p269_p3 = scmp.lt.s32.totalorder (!%p238_p2), %s985_s25, 1 }
   0x6   : > { %241 = sbr.rel (%p238_p2) target bundleno = 347 (0x15b), region = 48 }
   0xb   : > { %v1313_v0 = vld [vmem:[%s1654_s1 + $0x78] sm:$0xff]  ;;  %v1312_v3 = vld [vmem:[%s1654_s1 + $0x70] sm:$0xff]  ;;  %v1311_v6 = vld [vmem:[%s1654_s1 + $0x68] sm:$0xff]  ;;  %s1666_s25 = smov (!%p269_p3, %s985_s25), 1  ;;  %v282_v16 = vlaneseq  ;;  %vm1374_vm4 = vmmov 1  }
   0xc   : > { %v1305_v1 = vld [vmem:[%s1654_s1 + $0x38] sm:$0xff]  ;;  %418 = vmatpush.bf16.msra.mxu0 %v1313_v0  ;;  %v1304_v4 = vld [vmem:[%s1654_s1 + $0x30] sm:$0xff]  ;;  %v1303_v7 = vld [vmem:[%s1654_s1 + $0x28] sm:$0xff]  ;;  %s1296_s8 = sshll.u32 %s1666_s25, 4 }
   0xd   : > { %v1321_v2 = vld [vmem:[%s1654_s1 + $0xb8] sm:$0xff]  ;;  %480 = vmatpush.bf16.msra.mxu1 %v1305_v1  ;;  %v1320_v5 = vld [vmem:[%s1654_s1 + $0xb0] sm:$0xff]  ;;  %v1319_v8 = vld [vmem:[%s1654_s1 + $0xa8] sm:$0xff]  ;;  %s273_s19 = scalar_lea.vmem %s1653_s0, %s1296_s8  ;;  %v1488_v22 = vshrl.u32 %v282_v16, 7  ;;  %s278_s28 = scalar_lea.vmem %s1660_s7, %s1296_s8 }
   0xe   : > { %559 = vmatpush.bf16.msra.mxu2 %v1321_v2  ;;  %v1310_v9 = vld [vmem:[%s1654_s1 + $0x60] sm:$0xff]  ;;  %v1337_v11 = vld [vmem:[%s1656_s3 + $0x78] sm:$0xff]  ;;  %v1336_v13 = vld [vmem:[%s1656_s3 + $0x70] sm:$0xff] }
   0xf   : > { %v1302_v10 = vld [vmem:[%s1654_s1 + $0x20] sm:$0xff]  ;;  %679 = vmatpush.bf16.msra.mxu3 %v1337_v11  ;;  %v1309_v14 = vld [vmem:[%s1654_s1 + $0x58] sm:$0xff]  ;;  %v1308_v18 = vld [vmem:[%s1654_s1 + $0x50] sm:$0xff]  ;;  %v289_v28 = vand.u32 15, %v1488_v22  ;;  %vm341_vm0 = vcmp.lt.s32.totalorder %v1488_v22, 2  ;;  %vm311_vm1 = vcmp.lt.s32.totalorder %v1488_v22, 4 }
  0x10   : > { %419 = vmatpush.bf16.msra.mxu0 %v1312_v3  ;;  %v1318_v12 = vld [vmem:[%s1654_s1 + $0xa0] sm:$0xff]  ;;  %v1301_v15 = vld [vmem:[%s1654_s1 + $0x18] sm:$0xff]  ;;  %v1300_v19 = vld [vmem:[%s1654_s1 + $0x10] sm:$0xff] }
  0x11   : > { %481 = vmatpush.bf16.msra.mxu1 %v1304_v4  ;;  %v1317_v17 = vld [vmem:[%s1654_s1 + $0x98] sm:$0xff]  ;;  %v279_v20 = vld [vmem:[%s273_s19] sm:$0xff]  ;;  %v280_v21 = vld [vmem:[%s273_s19 + $0x8] sm:$0xff]  ;;  %vm344_vm2 = vcmp.ge.s32.totalorder %v289_v28, 2  ;;  %vm314_vm3 = vcmp.ge.s32.totalorder %v289_v28, 4 }
  0x12   : > { %560 = vmatpush.bf16.msra.mxu2 %v1320_v5  ;;  %v1316_v23 = vld [vmem:[%s1654_s1 + $0x90] sm:$0xff]  ;;  %v339_v24 = vrot.slane %v279_v20, 6  ;;  %v340_v25 = vrot.slane %v280_v21, 6  ;;  %v1307_v26 = vld [vmem:[%s1654_s1 + $0x48] sm:$0xff]  ;;  %v309_v29 = vrot.slane %v279_v20, 4  ;;  %v310_v30 = vrot.slane %v280_v21, 4  ;;  %vm1531_vm5 = vmpackc.low %vm1374_vm4, %vm344_vm2 }
  0x13   : > { %680 = vmatpush.bf16.msra.mxu3 %v1336_v13  ;;  %v1299_v27 = vld [vmem:[%s1654_s1 + $0x8] sm:$0xff]  ;;  %v1306_v33 = vld [vmem:[%s1654_s1 + $0x40] sm:$0xff]  ;;  %v1345_v39 = vld [vmem:[%s1656_s3 + $0xb8] sm:$0xff]  ;;  %v281_v46 = vpack.c.bf16 %v280_v21, %v279_v20 }
  0x14   : > { %420 = vmatpush.bf16.msra.mxu0 %v1311_v6  ;;  %v1315_v31 = vld [vmem:[%s1654_s1 + $0x88] sm:$0xff]  ;;  %v342_v32 = vsel %vm341_vm0, %v339_v24, %v340_v25  ;;  %v1298_v34 = vld [vmem:[%s1654_s1] sm:$0xff]  ;;  %v343_v35 = vsel %vm341_vm0, %v340_v25, %v339_v24  ;;  %v312_v36 = vsel %vm311_vm1, %v309_v29, %v310_v30  ;;  %v313_v37 = vsel %vm311_vm1, %v310_v30, %v309_v29  ;;  %v1353_v40 = vld [vmem:[%s1658_s5 + $0x38] sm:$0xff] }
  0x15   : > { %482 = vmatpush.bf16.msra.mxu1 %v1303_v7  ;;  %v1314_v38 = vld [vmem:[%s1654_s1 + $0x80] sm:$0xff]  ;;  %v1329_v41 = vld [vmem:[%s1656_s3 + $0x38] sm:$0xff]  ;;  %v1043_v43 = vpack.c.bf16 %v342_v32, %v343_v35  ;;  %v1078_v44 = vpack.c.bf16 %v312_v36, %v313_v37  ;;  %vm1535_vm6 = vmpackc.low %vm1374_vm4, %vm314_vm3 }
  0x16   : > { %561 = vmatpush.bf16.msra.mxu2 %v1319_v8  ;;  %v1344_v47 = vld [vmem:[%s1656_s3 + $0xb0] sm:$0xff]  ;;  %v1343_v50 = vld [vmem:[%s1656_s3 + $0xa8] sm:$0xff]  ;;  %v1342_v54 = vld [vmem:[%s1656_s3 + $0xa0] sm:$0xff] }
  0x17   : > { %v1352_v48 = vld [vmem:[%s1658_s5 + $0x30] sm:$0xff]  ;;  %v1351_v51 = vld [vmem:[%s1658_s5 + $0x28] sm:$0xff]  ;;  %v1350_v55 = vld [vmem:[%s1658_s5 + $0x20] sm:$0xff] }
  0x18   : > { %421 = vmatpush.bf16.msra.mxu0 %v1310_v9  ;;  %v1328_v49 = vld [vmem:[%s1656_s3 + $0x30] sm:$0xff]  ;;  %v1335_v52 = vld [vmem:[%s1656_s3 + $0x68] sm:$0xff]  ;;  %v1334_v56 = vld [vmem:[%s1656_s3 + $0x60] sm:$0xff] }
  0x19   : > { %483 = vmatpush.bf16.msra.mxu1 %v1302_v10  ;;  %v1327_v53 = vld [vmem:[%s1656_s3 + $0x28] sm:$0xff]  ;;  %681 = vmatpush.bf16.msra.mxu3 %v1335_v52  ;;  %v1326_v57 = vld [vmem:[%s1656_s3 + $0x20] sm:$0xff]  ;;  %v1341_v58 = vld [vmem:[%s1656_s3 + $0x98] sm:$0xff] }
  0x1a   : > { %562 = vmatpush.bf16.msra.mxu2 %v1318_v12  ;;  %v1349_v59 = vld [vmem:[%s1658_s5 + $0x18] sm:$0xff]  ;;  %v1340_v62 = vld [vmem:[%s1656_s3 + $0x90] sm:$0xff]  ;;  %v1339_v2 = vld [vmem:[%s1656_s3 + $0x88] sm:$0xff] }
  0x1b   : > { %v1333_v60 = vld [vmem:[%s1656_s3 + $0x58] sm:$0xff]  ;;  %v1348_v63 = vld [vmem:[%s1658_s5 + $0x10] sm:$0xff]  ;;  %v1347_v3 = vld [vmem:[%s1658_s5 + $0x8] sm:$0xff] }
  0x1c   : > { %422 = vmatpush.bf16.msra.mxu0 %v1309_v14  ;;  %v1325_v61 = vld [vmem:[%s1656_s3 + $0x18] sm:$0xff]  ;;  %v1332_v0 = vld [vmem:[%s1656_s3 + $0x50] sm:$0xff]  ;;  %v1331_v4 = vld [vmem:[%s1656_s3 + $0x48] sm:$0xff] }
  0x1d   : > { %484 = vmatpush.bf16.msra.mxu1 %v1301_v15  ;;  %682 = vmatpush.bf16.msra.mxu3 %v1334_v56  ;;  %v1324_v1 = vld [vmem:[%s1656_s3 + $0x10] sm:$0xff]  ;;  %v1323_v5 = vld [vmem:[%s1656_s3 + $0x8] sm:$0xff]  ;;  %v1338_v6 = vld [vmem:[%s1656_s3 + $0x80] sm:$0xff] }
  0x1e   : > { %563 = vmatpush.bf16.msra.mxu2 %v1317_v17  ;;  %v1346_v7 = vld [vmem:[%s1658_s5] sm:$0xff] }
  0x1f   : > { %v1330_v8 = vld [vmem:[%s1656_s3 + $0x40] sm:$0xff] }
  0x20   : > { %423 = vmatpush.bf16.msra.mxu0 %v1308_v18  ;;  %v1322_v9 = vld [vmem:[%s1656_s3] sm:$0xff] }
  0x21   : > { %485 = vmatpush.bf16.msra.mxu1 %v1300_v19  ;;  %683 = vmatpush.bf16.msra.mxu3 %v1333_v60  ;;  %v1363_v15 = vld [vmem:[%s1655_s2] ss:$0 sm:$0xff] }
  0x22   : > { %564 = vmatpush.bf16.msra.mxu2 %v1316_v23  ;;  %v1365_v22 = vld [vmem:[%s1657_s4] ss:$0 sm:$0xff] }
  0x24   : > { %424 = vmatpush.bf16.msra.mxu0 %v1307_v26 }
  0x25   : > { %486 = vmatpush.bf16.msra.mxu1 %v1299_v27  ;;  %684 = vmatpush.bf16.msra.mxu3 %v1332_v0 }
  0x26   : > { %565 = vmatpush.bf16.msra.mxu2 %v1315_v31 }
  0x28   : > { %425 = vmatpush.bf16.msra.mxu0 %v1306_v33 }
  0x29   : > { %487 = vmatpush.bf16.msra.mxu1 %v1298_v34  ;;  %685 = vmatpush.bf16.msra.mxu3 %v1331_v4 }
  0x2a   : > { %566 = vmatpush.bf16.msra.mxu2 %v1314_v38 }
  0x2b   : > { %1044 = vmatmul.msk.bf16.vlgmr.msra.gmra.mxu0 %vm1531_vm5, %v1043_v43 }
  0x2c   : > { %741 = vmatpush.bf16.msrb.mxu0 %v1329_v41  ;;  %1079 = vmatmul.msk.bf16.vlgmr.msra.gmra.mxu1 %vm1535_vm6, %v1078_v44 }
  0x2d   : > { %820 = vmatpush.bf16.msrb.mxu1 %v1345_v39  ;;  %567 = vmatmul.bf16.vlgmr.msra.gmra.mxu2 %v281_v46 }
  0x2e   : > { %912 = vmatpush.bf16.msrb.mxu2 %v1353_v40  ;;  %686 = vmatpush.bf16.msra.mxu3 %v1330_v8  ;;  %v1364_v40 = vld [vmem:[%s1659_s6] ss:$0 sm:$0xff] }
  0x30   : > { %742 = vmatpush.bf16.msrb.mxu0 %v1328_v49 }
  0x31   : > { %821 = vmatpush.bf16.msrb.mxu1 %v1344_v47 }
  0x32   : > { %913 = vmatpush.bf16.msrb.mxu2 %v1352_v48 }
  0x34   : > { %743 = vmatpush.bf16.msrb.mxu0 %v1327_v53 }
  0x35   : > { %822 = vmatpush.bf16.msrb.mxu1 %v1343_v50 }
  0x36   : > { %914 = vmatpush.bf16.msrb.mxu2 %v1351_v51 }
  0x38   : > { %744 = vmatpush.bf16.msrb.mxu0 %v1326_v57 }
  0x39   : > { %823 = vmatpush.bf16.msrb.mxu1 %v1342_v54 }
  0x3a   : > { %915 = vmatpush.bf16.msrb.mxu2 %v1350_v55 }
  0x3c   : > { %745 = vmatpush.bf16.msrb.mxu0 %v1325_v61 }
  0x3d   : > { %824 = vmatpush.bf16.msrb.mxu1 %v1341_v58 }
  0x3e   : > { %916 = vmatpush.bf16.msrb.mxu2 %v1349_v59 }
  0x40   : > { %746 = vmatpush.bf16.msrb.mxu0 %v1324_v1 }
  0x41   : > { %825 = vmatpush.bf16.msrb.mxu1 %v1340_v62 }
  0x42   : > { %917 = vmatpush.bf16.msrb.mxu2 %v1348_v63 }
  0x44   : > { %747 = vmatpush.bf16.msrb.mxu0 %v1323_v5 }
  0x45   : > { %826 = vmatpush.bf16.msrb.mxu1 %v1339_v2 }
  0x46   : > { %918 = vmatpush.bf16.msrb.mxu2 %v1347_v3 }
  0x48   : > { %748 = vmatpush.bf16.msrb.mxu0 %v1322_v9 }
  0x49   : > { %827 = vmatpush.bf16.msrb.mxu1 %v1338_v6 }
  0x4a   : > { %919 = vmatpush.bf16.msrb.mxu2 %v1346_v7 }
  0x4d   : > { %920 = vmatmul.bf16.vlgmr.msrb.gmra.mxu2 %v281_v46 }
  0xa8   : > { %v427_v10 = vpop.f32.mrf.mxu0 }
  0xa9   : > { %v489_v11 = vpop.f32.mrf.mxu1 }
  0xaa   : > { %v490_v12 = vadd.f32 %v489_v11, %v427_v10 }
  0xb0   : > { %v568_v13 = vpop.f32.mrf.mxu2  ;;  %v429_v16 = vpop.f32.mrf.mxu0 }
  0xb1   : > { %v573_v14 = vadd.f32 %v568_v13, %v490_v12  ;;  %v491_v17 = vpop.f32.mrf.mxu1 }
  0xb2   : > { %v492_v19 = vadd.f32 %v491_v17, %v429_v16 }
  0xb3   : > { %v579_v18 = vadd.f32 %v1363_v15, %v573_v14 }
  0xb5   : > { %v581_v23 = vmax.f32 %v579_v18, 0.0 }
  0xb7   : > { %v584_v26 = vrot.slane %v581_v23, 4  ;;  %v607_v27 = vrot.slane %v581_v23, 6 }
  0xb8   : > { %v570_v20 = vpop.f32.mrf.mxu2 }
  0xb9   : > { %v574_v21 = vadd.f32 %v570_v20, %v492_v19 }
  0xbb   : > { %v580_v24 = vadd.f32 %v1363_v15, %v574_v21 }
  0xbd   : > { %v582_v25 = vmax.f32 %v580_v24, 0.0 }
  0xbf   : > { %v585_v28 = vrot.slane %v582_v25, 4  ;;  %v608_v29 = vrot.slane %v582_v25, 6  ;;  %v583_v30 = vpack.c.bf16 %v582_v25, %v581_v23 }
  0xc1   : > { %828 = vmatmul.bf16.vlgmr.msrb.gmra.mxu1 %v583_v30  ;;  %v609_v31 = vsel %vm341_vm0, %v607_v27, %v608_v29  ;;  %v610_v32 = vsel %vm341_vm0, %v608_v29, %v607_v27  ;;  %v586_v33 = vsel %vm311_vm1, %v584_v26, %v585_v28  ;;  %v587_v34 = vsel %vm311_vm1, %v585_v28, %v584_v26 }
  0xc2   : > { %v1177_v35 = vpack.c.bf16 %v609_v31, %v610_v32  ;;  %v1212_v36 = vpack.c.bf16 %v586_v33, %v587_v34 }
  0xc4   : > { %1178 = vmatmul.msk.bf16.vlgmr.msra.gmra.mxu3 %vm1531_vm5, %v1177_v35  ;;  %1213 = vmatmul.msk.bf16.vlgmr.msrb.gmra.mxu0 %vm1535_vm6, %v1212_v36 }
  0xd0   : > { %v921_v43 = vpop.f32.mrf.mxu2 }
  0xd1   : > { %v922_v46 = vadd.f32 %v1364_v40, %v921_v43 }
  0xd8   : > { %v923_v53 = vpop.f32.mrf.mxu2 }
  0xd9   : > { %v924_v55 = vadd.f32 %v1364_v40, %v923_v53 }
 0x13e   : > { %v829_v38 = vpop.f32.mrf.mxu1 }
 0x141   : > { %v750_v37 = vpop.f32.mrf.mxu0 }
 0x146   : > { %v831_v51 = vpop.f32.mrf.mxu1 }
 0x147   : > { %v688_v39 = vpop.f32.mrf.mxu3 }
 0x148   : > { %v751_v41 = vadd.f32 %v750_v37, %v688_v39 }
 0x149   : > { %v752_v45 = vpop.f32.mrf.mxu0 }
 0x14a   : > { %v834_v44 = vadd.f32 %v829_v38, %v751_v41 }
 0x14c   : > { %v840_v42 = vadd.f32 %v1365_v22, %v834_v44 }
 0x14e   : > { %v842_v47 = vmax.f32 %v840_v42, 0.0 }
 0x14f   : > { %v690_v48 = vpop.f32.mrf.mxu3 }
 0x150   : > { %v926_v49 = vadd.f32 %v922_v46, %v842_v47  ;;  %v753_v50 = vadd.f32 %v752_v45, %v690_v48 }
 0x152   : > { %928 = vst [vmem:[%s278_s28] sm:$0xff] %v926_v49  ;;  %v835_v52 = vadd.f32 %v831_v51, %v753_v50 }
 0x154   : > { %v841_v54 = vadd.f32 %v1365_v22, %v835_v52 }
 0x156   : > { %v843_v56 = vmax.f32 %v841_v54, 0.0 }
 0x158   : > { %v927_v57 = vadd.f32 %v924_v55, %v843_v56 }
 0x15a   : > { %929 = vst [vmem:[%s278_s28 + $0x8] sm:$0xff] %v927_v57 }
 0x15b PF: > { %s17_s24 = sadd.s32 1, %s1372_s24  }
 0x15c   : > { %p14_p4 = scmp.ge.s32.totalorder %s17_s24, 4  }
 0x15e   :  { %16 = sbr.rel (!%p14_p4) target bundleno = 1 (0x1), region = 82 }

</bundles_post_ra>
